<compile_context>
chip_gen: v6e
topology: v6e:2x2x1
jax: 0.10.0
libtpu: 0.0.40
codegen_flags: <defaults>
</compile_context>

<pallas_src>
import functools

import jax
import jax.numpy as jnp
from jax.experimental import pallas as pl
from jax.experimental.pallas import tpu as pltpu

_LANE = 128
_SUBLANE = 8


def _round_up(n, m):
    return ((n + m - 1) // m) * m


def _mlp_kernel(x_ref,
                w1_ref, b1_ref,
                w2_ref, b2_ref,
                w3_ref, b3_ref,
                w4_ref, b4_ref,
                out_ref, logit_ref):
    """Whole forward pass for one TM-row batch tile; weights stay VMEM-resident."""
    cdt = w1_ref.dtype                      # MXU operand dtype (f32 or bf16)
    x = x_ref[...].astype(cdt)

    # fc1..fc3: MXU matmul (f32 accumulation) + f32 bias + tanh (EUP), cast back for MXU.
    h = jnp.tanh(jnp.dot(x, w1_ref[...], preferred_element_type=jnp.float32)
                 + b1_ref[...]).astype(cdt)
    h = jnp.tanh(jnp.dot(h, w2_ref[...], preferred_element_type=jnp.float32)
                 + b2_ref[...]).astype(cdt)
    h = jnp.tanh(jnp.dot(h, w3_ref[...], preferred_element_type=jnp.float32)
                 + b3_ref[...]).astype(cdt)

    # fc4: class dim is zero-padded to 128 lanes -> lane-dense unmasked stores below.
    logit = (jnp.dot(h, w4_ref[...], preferred_element_type=jnp.float32)
             + b4_ref[...])

    logit_ref[...] = logit
    out_ref[...] = jax.nn.sigmoid(logit)    # exp/recip on the EUP slot


@functools.partial(jax.jit, static_argnames=("compute_dtype", "block_batch"))
def neural_net_forward(x, params, compute_dtype=jnp.float32, block_batch=256):
    """Returns (sigmoid_out, logit), both (batch, num_classes) float32.

    params: dict with w1..w4 shaped (in_features, out_features) and b1..b4 shaped
    (1, out_features); weights are stored transposed vs torch.nn.Linear so the
    kernel computes y = x @ W + b directly on the MXU.
    """
    batch, input_size = x.shape
    num_classes = params["w4"].shape[1]
    cdt = jnp.dtype(compute_dtype)

    # Batch tile: multiple of 8 sublanes, capped at block_batch rows per grid step.
    tm = min(block_batch, _round_up(batch, _SUBLANE))
    num_tiles = pl.cdiv(batch, tm)
    padded_batch = num_tiles * tm

    # Lane-dense output: pad the class dim of fc4 up to a full 128-lane register.
    padded_classes = _round_up(num_classes, _LANE)

    x_p = x.astype(cdt)
    if padded_batch != batch:
        x_p = jnp.pad(x_p, ((0, padded_batch - batch), (0, 0)))

    w1 = params["w1"].astype(cdt)
    w2 = params["w2"].astype(cdt)
    w3 = params["w3"].astype(cdt)
    w4 = params["w4"].astype(cdt)
    b1 = params["b1"].astype(jnp.float32)
    b2 = params["b2"].astype(jnp.float32)
    b3 = params["b3"].astype(jnp.float32)
    b4 = params["b4"].astype(jnp.float32)
    if padded_classes != num_classes:
        w4 = jnp.pad(w4, ((0, 0), (0, padded_classes - num_classes)))
        b4 = jnp.pad(b4, ((0, 0), (0, padded_classes - num_classes)))

    # Weights/biases: full-array blocks, constant index_map -> VMEM-resident across steps.
    def pinned(a):
        nd = a.ndim
        return pl.BlockSpec(a.shape, lambda i: (0,) * nd)

    # VMEM budget: resident weights + double-buffered x / out / logit tiles + headroom.
    # TODO(synk): once hidden_size >= ~2048 f32 the hxh weights no longer fit resident on
    # v7x's 64 MiB VMEM; at that point add a K-tiled grid axis for fc2/fc3.
    weight_bytes = sum(int(a.size) * a.dtype.itemsize
                       for a in (w1, b1, w2, b2, w3, b3, w4, b4))
    tile_bytes = (tm * input_size * cdt.itemsize        # x tile
                  + 2 * tm * padded_classes * 4)        # out + logit tiles (f32)
    vmem_limit = 2 * weight_bytes + 4 * tile_bytes + (8 << 20)
    vmem_limit = max(16 << 20, min(int(vmem_limit), 48 << 20))

    out_pad, logit_pad = pl.pallas_call(
        _mlp_kernel,
        out_shape=(
            jax.ShapeDtypeStruct((padded_batch, padded_classes), jnp.float32),
            jax.ShapeDtypeStruct((padded_batch, padded_classes), jnp.float32),
        ),
        grid=(num_tiles,),
        in_specs=[
            pl.BlockSpec((tm, input_size), lambda i: (i, 0)),
            pinned(w1), pinned(b1),
            pinned(w2), pinned(b2),
            pinned(w3), pinned(b3),
            pinned(w4), pinned(b4),
        ],
        out_specs=(
            pl.BlockSpec((tm, padded_classes), lambda i: (i, 0)),
            pl.BlockSpec((tm, padded_classes), lambda i: (i, 0)),
        ),
        compiler_params=pltpu.CompilerParams(
            dimension_semantics=("parallel",),
            vmem_limit_bytes=vmem_limit,
        ),
    )(x_p, w1, b1, w2, b2, w3, b3, w4, b4)

    out = out_pad[:batch, :num_classes]
    logit = logit_pad[:batch, :num_classes]
    return out, logit


def neural_net_apply(x, params, return_logit=False, compute_dtype=jnp.float32):
    """Mirrors NeuralNet.forward(x, return_logit)."""
    out, logit = neural_net_forward(x, params, compute_dtype=compute_dtype)
    return logit if return_logit else out


def init_params(key, input_size, hidden_size, num_classes):
    """Deterministic init mimicking torch.nn.Linear: U(-1/sqrt(fan_in), 1/sqrt(fan_in))."""
    dims = [(input_size, hidden_size),
            (hidden_size, hidden_size),
            (hidden_size, hidden_size),
            (hidden_size, num_classes)]
    params = {}
    for i, (fan_in, fan_out) in enumerate(dims, start=1):
        key, kw, kb = jax.random.split(key, 3)
        bound = 1.0 / jnp.sqrt(jnp.float32(fan_in))
        params[f"w{i}"] = jax.random.uniform(
            kw, (fan_in, fan_out), jnp.float32, -bound, bound)
        params[f"b{i}"] = jax.random.uniform(
            kb, (1, fan_out), jnp.float32, -bound, bound)
    return params


def _reference_f32(x, params):
    h = jnp.tanh(x @ params["w1"] + params["b1"])
    h = jnp.tanh(h @ params["w2"] + params["b2"])
    h = jnp.tanh(h @ params["w3"] + params["b3"])
    logit = h @ params["w4"] + params["b4"]
    return jax.nn.sigmoid(logit), logit


def _reference_cast(x, params, cdt):
    """Reference with the same operand casts / f32 accumulation as the kernel."""
    h = x.astype(cdt)
    for i in (1, 2, 3):
        h = jnp.tanh(
            jnp.dot(h, params[f"w{i}"].astype(cdt), preferred_element_type=jnp.float32)
            + params[f"b{i}"].astype(jnp.float32)).astype(cdt)
    logit = (jnp.dot(h, params["w4"].astype(cdt), preferred_element_type=jnp.float32)
             + params["b4"].astype(jnp.float32))
    return jax.nn.sigmoid(logit), logit


if __name__ == "__main__":
    input_size, hidden_size, num_classes = 16, 32, 4
    batch = 8

    key = jax.random.PRNGKey(0)
    key, kx = jax.random.split(key)
    x = jax.random.normal(kx, (batch, input_size), jnp.float32)
    params = init_params(key, input_size, hidden_size, num_classes)

    # --- f32 path (default): exact semantics of the PyTorch module, one kernel launch ---
    out_f32, logit_f32 = neural_net_forward(x, params)
    jax.block_until_ready((out_f32, logit_f32))
    ref_out, ref_logit = _reference_f32(x, params)
    assert out_f32.shape == (batch, num_classes)
    assert logit_f32.shape == (batch, num_classes)
    assert jnp.allclose(out_f32, ref_out, atol=1e-5), "f32 sigmoid output mismatch"
    assert jnp.allclose(logit_f32, ref_logit, atol=1e-5), "f32 logit mismatch"

    # --- forward(x, return_logit=...) convenience wrapper -------------------------------
    assert jnp.allclose(neural_net_apply(x, params, return_logit=True), ref_logit, atol=1e-5)
    assert jnp.allclose(neural_net_apply(x, params, return_logit=False), ref_out, atol=1e-5)

    # --- bf16 path: bf16 MXU operands, f32 accumulation ---------------------------------
    out_bf, logit_bf = neural_net_forward(x, params, compute_dtype=jnp.bfloat16)
    jax.block_until_ready((out_bf, logit_bf))
    ref_out_bf, ref_logit_bf = _reference_cast(x, params, jnp.bfloat16)
    assert jnp.allclose(logit_bf, ref_logit_bf, atol=2e-2, rtol=2e-2), "bf16 logit mismatch"
    assert jnp.allclose(out_bf, ref_out_bf, atol=2e-2, rtol=2e-2), "bf16 sigmoid mismatch"

    # --- larger batch exercises the batch grid + row-padding path -----------------------
    x_big = jax.random.normal(jax.random.PRNGKey(1), (300, input_size), jnp.float32)
    out_big, logit_big = neural_net_forward(x_big, params)
    jax.block_until_ready((out_big, logit_big))
    ref_out_big, ref_logit_big = _reference_f32(x_big, params)
    assert out_big.shape == (300, num_classes)
    assert jnp.allclose(logit_big, ref_logit_big, atol=1e-5), "big-batch logit mismatch"
    assert jnp.allclose(out_big, ref_out_big, atol=1e-5), "big-batch sigmoid mismatch"

    print("KERNEL_OK")
</pallas_src>

<mosaic_0001>
module attributes {stable_mosaic.version = 11 : i64} {
  func.func @_mlp_kernel(%arg0: i32, %arg1: memref<8x16xf32, #tpu.memory_space<vmem>>, %arg2: memref<16x32xf32, #tpu.memory_space<vmem>>, %arg3: memref<1x32xf32, #tpu.memory_space<vmem>>, %arg4: memref<32x32xf32, #tpu.memory_space<vmem>>, %arg5: memref<1x32xf32, #tpu.memory_space<vmem>>, %arg6: memref<32x32xf32, #tpu.memory_space<vmem>>, %arg7: memref<1x32xf32, #tpu.memory_space<vmem>>, %arg8: memref<32x128xf32, #tpu.memory_space<vmem>>, %arg9: memref<1x128xf32, #tpu.memory_space<vmem>>, %arg10: memref<8x128xf32, #tpu.memory_space<vmem>>, %arg11: memref<8x128xf32, #tpu.memory_space<vmem>>) attributes {dimension_semantics = [#tpu.dimension_semantics<parallel>], iteration_bounds = array<i64: 1>, scalar_prefetch = 0 : i64, scratch_operands = 0 : i64, tpu.core_type = #tpu.core_type<tc>, window_params = [{transform_indices = @transform_0, window_bounds = array<i64: 8, 16>}, {pipeline_mode = #tpu.pipeline_mode<synchronous>, transform_indices = @transform_1, window_bounds = array<i64: 16, 32>}, {pipeline_mode = #tpu.pipeline_mode<synchronous>, transform_indices = @transform_2, window_bounds = array<i64: 1, 32>}, {pipeline_mode = #tpu.pipeline_mode<synchronous>, transform_indices = @transform_3, window_bounds = array<i64: 32, 32>}, {pipeline_mode = #tpu.pipeline_mode<synchronous>, transform_indices = @transform_4, window_bounds = array<i64: 1, 32>}, {pipeline_mode = #tpu.pipeline_mode<synchronous>, transform_indices = @transform_5, window_bounds = array<i64: 32, 32>}, {pipeline_mode = #tpu.pipeline_mode<synchronous>, transform_indices = @transform_6, window_bounds = array<i64: 1, 32>}, {pipeline_mode = #tpu.pipeline_mode<synchronous>, transform_indices = @transform_7, window_bounds = array<i64: 32, 128>}, {pipeline_mode = #tpu.pipeline_mode<synchronous>, transform_indices = @transform_8, window_bounds = array<i64: 1, 128>}, {transform_indices = @transform_9, window_bounds = array<i64: 8, 128>}, {transform_indices = @transform_10, window_bounds = array<i64: 8, 128>}]} {
    %c0 = arith.constant 0 : index
    %c0_0 = arith.constant 0 : index
    %0 = vector.load %arg1[%c0, %c0_0] : memref<8x16xf32, #tpu.memory_space<vmem>>, vector<8x16xf32>
    %c0_1 = arith.constant 0 : index
    %c0_2 = arith.constant 0 : index
    %1 = vector.load %arg2[%c0_1, %c0_2] : memref<16x32xf32, #tpu.memory_space<vmem>>, vector<16x32xf32>
    %cst = arith.constant dense<0.000000e+00> : vector<8x32xf32>
    %2 = tpu.matmul %0, %1, %cst {dimension_numbers = #tpu.dot_dimension_numbers<[1], [0], [0], [1], [0, 0, 1, 1], [], []>} : vector<8x16xf32>, vector<16x32xf32>, vector<8x32xf32> -> vector<8x32xf32>
    %c0_3 = arith.constant 0 : index
    %c0_4 = arith.constant 0 : index
    %3 = vector.load %arg3[%c0_3, %c0_4] : memref<1x32xf32, #tpu.memory_space<vmem>>, vector<1x32xf32>
    %4 = vector.broadcast %3 : vector<1x32xf32> to vector<8x32xf32>
    %5 = arith.addf %2, %4 : vector<8x32xf32>
    %6 = math.tanh %5 : vector<8x32xf32>
    %c0_5 = arith.constant 0 : index
    %c0_6 = arith.constant 0 : index
    %7 = vector.load %arg4[%c0_5, %c0_6] : memref<32x32xf32, #tpu.memory_space<vmem>>, vector<32x32xf32>
    %cst_7 = arith.constant dense<0.000000e+00> : vector<8x32xf32>
    %8 = tpu.matmul %6, %7, %cst_7 {dimension_numbers = #tpu.dot_dimension_numbers<[1], [0], [0], [1], [0, 0, 1, 1], [], []>} : vector<8x32xf32>, vector<32x32xf32>, vector<8x32xf32> -> vector<8x32xf32>
    %c0_8 = arith.constant 0 : index
    %c0_9 = arith.constant 0 : index
    %9 = vector.load %arg5[%c0_8, %c0_9] : memref<1x32xf32, #tpu.memory_space<vmem>>, vector<1x32xf32>
    %10 = vector.broadcast %9 : vector<1x32xf32> to vector<8x32xf32>
    %11 = arith.addf %8, %10 : vector<8x32xf32>
    %12 = math.tanh %11 : vector<8x32xf32>
    %c0_10 = arith.constant 0 : index
    %c0_11 = arith.constant 0 : index
    %13 = vector.load %arg6[%c0_10, %c0_11] : memref<32x32xf32, #tpu.memory_space<vmem>>, vector<32x32xf32>
    %cst_12 = arith.constant dense<0.000000e+00> : vector<8x32xf32>
    %14 = tpu.matmul %12, %13, %cst_12 {dimension_numbers = #tpu.dot_dimension_numbers<[1], [0], [0], [1], [0, 0, 1, 1], [], []>} : vector<8x32xf32>, vector<32x32xf32>, vector<8x32xf32> -> vector<8x32xf32>
    %c0_13 = arith.constant 0 : index
    %c0_14 = arith.constant 0 : index
    %15 = vector.load %arg7[%c0_13, %c0_14] : memref<1x32xf32, #tpu.memory_space<vmem>>, vector<1x32xf32>
    %16 = vector.broadcast %15 : vector<1x32xf32> to vector<8x32xf32>
    %17 = arith.addf %14, %16 : vector<8x32xf32>
    %18 = math.tanh %17 : vector<8x32xf32>
    %c0_15 = arith.constant 0 : index
    %c0_16 = arith.constant 0 : index
    %19 = vector.load %arg8[%c0_15, %c0_16] : memref<32x128xf32, #tpu.memory_space<vmem>>, vector<32x128xf32>
    %cst_17 = arith.constant dense<0.000000e+00> : vector<8x128xf32>
    %20 = tpu.matmul %18, %19, %cst_17 {dimension_numbers = #tpu.dot_dimension_numbers<[1], [0], [0], [1], [0, 0, 1, 1], [], []>} : vector<8x32xf32>, vector<32x128xf32>, vector<8x128xf32> -> vector<8x128xf32>
    %c0_18 = arith.constant 0 : index
    %c0_19 = arith.constant 0 : index
    %21 = vector.load %arg9[%c0_18, %c0_19] : memref<1x128xf32, #tpu.memory_space<vmem>>, vector<1x128xf32>
    %22 = vector.broadcast %21 : vector<1x128xf32> to vector<8x128xf32>
    %23 = arith.addf %20, %22 : vector<8x128xf32>
    %c0_20 = arith.constant 0 : index
    %c0_21 = arith.constant 0 : index
    %24 = vector.load %arg11[%c0_20, %c0_21] : memref<8x128xf32, #tpu.memory_space<vmem>>, vector<8x128xf32>
    tpu.vector_store %arg11[%c0_20, %c0_21], %23 {strides = array<i32>} : memref<8x128xf32, #tpu.memory_space<vmem>>, vector<8x128xf32>,
    %25 = arith.negf %23 : vector<8x128xf32>
    %26 = math.exp %25 : vector<8x128xf32>
    %cst_22 = arith.constant 1.000000e+00 : f32
    %27 = vector.broadcast %cst_22 : f32 to vector<8x128xf32>
    %28 = arith.addf %27, %26 : vector<8x128xf32>
    %29 = arith.divf %27, %28 : vector<8x128xf32>
    %c0_23 = arith.constant 0 : index
    %c0_24 = arith.constant 0 : index
    %30 = vector.load %arg10[%c0_23, %c0_24] : memref<8x128xf32, #tpu.memory_space<vmem>>, vector<8x128xf32>
    tpu.vector_store %arg10[%c0_23, %c0_24], %29 {strides = array<i32>} : memref<8x128xf32, #tpu.memory_space<vmem>>, vector<8x128xf32>,
    return
  }
  func.func @transform_0(%arg0: i32) -> (i32, i32) {
    %c0_i32 = arith.constant 0 : i32
    %c0_i32_0 = arith.constant 0 : i32
    return %arg0, %c0_i32 : i32, i32
  }
  func.func @transform_1(%arg0: i32) -> (i32, i32) {
    %c0_i32 = arith.constant 0 : i32
    %c0_i32_0 = arith.constant 0 : i32
    %c0_i32_1 = arith.constant 0 : i32
    return %c0_i32, %c0_i32_0 : i32, i32
  }
  func.func @transform_2(%arg0: i32) -> (i32, i32) {
    %c0_i32 = arith.constant 0 : i32
    %c0_i32_0 = arith.constant 0 : i32
    %c0_i32_1 = arith.constant 0 : i32
    return %c0_i32, %c0_i32_0 : i32, i32
  }
  func.func @transform_3(%arg0: i32) -> (i32, i32) {
    %c0_i32 = arith.constant 0 : i32
    %c0_i32_0 = arith.constant 0 : i32
    %c0_i32_1 = arith.constant 0 : i32
    return %c0_i32, %c0_i32_0 : i32, i32
  }
  func.func @transform_4(%arg0: i32) -> (i32, i32) {
    %c0_i32 = arith.constant 0 : i32
    %c0_i32_0 = arith.constant 0 : i32
    %c0_i32_1 = arith.constant 0 : i32
    return %c0_i32, %c0_i32_0 : i32, i32
  }
  func.func @transform_5(%arg0: i32) -> (i32, i32) {
    %c0_i32 = arith.constant 0 : i32
    %c0_i32_0 = arith.constant 0 : i32
    %c0_i32_1 = arith.constant 0 : i32
    return %c0_i32, %c0_i32_0 : i32, i32
  }
  func.func @transform_6(%arg0: i32) -> (i32, i32) {
    %c0_i32 = arith.constant 0 : i32
    %c0_i32_0 = arith.constant 0 : i32
    %c0_i32_1 = arith.constant 0 : i32
    return %c0_i32, %c0_i32_0 : i32, i32
  }
  func.func @transform_7(%arg0: i32) -> (i32, i32) {
    %c0_i32 = arith.constant 0 : i32
    %c0_i32_0 = arith.constant 0 : i32
    %c0_i32_1 = arith.constant 0 : i32
    return %c0_i32, %c0_i32_0 : i32, i32
  }
  func.func @transform_8(%arg0: i32) -> (i32, i32) {
    %c0_i32 = arith.constant 0 : i32
    %c0_i32_0 = arith.constant 0 : i32
    %c0_i32_1 = arith.constant 0 : i32
    return %c0_i32, %c0_i32_0 : i32, i32
  }
  func.func @transform_9(%arg0: i32) -> (i32, i32) {
    %c0_i32 = arith.constant 0 : i32
    %c0_i32_0 = arith.constant 0 : i32
    return %arg0, %c0_i32 : i32, i32
  }
  func.func @transform_10(%arg0: i32) -> (i32, i32) {
    %c0_i32 = arith.constant 0 : i32
    %c0_i32_0 = arith.constant 0 : i32
    return %arg0, %c0_i32 : i32, i32
  }
}

</mosaic_0001>

<bundles_post_ra>
// kernel: neural_net_forward.1
= control target key start
LH: loop header
LB: loop body
LE: loop exit
PB: predicated region body
PF: predicated region fallthrough
CT: control target
= control target key end

     0   :  { %v469_v0 = vmov 0.0   ;;  %vm470_vm0 = vmmov 0   ;;  %vm44_vm1 = vcmask 130048   ;;  %vm130_vm2 = vcmask 261120   ;;  %s614_s1 = inlined_call_operand.vmem [shape: f32[16,32], index: 1, kind: input, shape index: {}]   ;;  %s615_s0 = inlined_call_operand.vmem [shape: f32[8,16], index: 0, kind: input, shape index: {}]   ;;  %s616_s3 = inlined_call_operand.vmem [shape: f32[32,32], index: 3, kind: input, shape index: {}]   ;;  %s617_s2 = inlined_call_operand.vmem [shape: f32[1,32], index: 2, kind: input, shape index: {}]   ;;  %s618_s5 = inlined_call_operand.vmem [shape: f32[32,32], index: 5, kind: input, shape index: {}]   ;;  %s619_s4 = inlined_call_operand.vmem [shape: f32[1,32], index: 4, kind: input, shape index: {}]   ;;  %s620_s7 = inlined_call_operand.vmem [shape: f32[32,128], index: 7, kind: input, shape index: {}]   ;;  %s621_s6 = inlined_call_operand.vmem [shape: f32[1,32], index: 6, kind: input, shape index: {}]   ;;  %s622_s8 = inlined_call_operand.vmem [shape: f32[1,128], index: 8, kind: input, shape index: {}]   ;;  %s623_s10 = inlined_call_operand.vmem [shape: f32[8,128], index: 10, kind: output, shape index: {1}]   ;;  %s624_s9 = inlined_call_operand.vmem [shape: f32[8,128], index: 9, kind: output, shape index: {0}]  }
   0x1   :  { %417 = vmatprep.subr.mxu0 %v469_v0  ;;  %v36_v1 = vld [vmem:[%s614_s1 + $0x8] sm:$0xff]  ;;  %v35_v2 = vld [vmem:[%s614_s1] sm:$0xff]  ;;  %421 = vmatprep.mubr.msk.f32.mxu0 %vm470_vm0, %v469_v0  ;;  %v122_v4 = vld [vmem:[%s616_s3 + $0x18] sm:$0xff] }
   0x2   :  { %418 = vmatpush3.msra.mxu0 %v36_v1  ;;  %v34_v3 = vld [vmem:[%s615_s0] sm:$0xff]  ;;  %424 = vmatprep.subr.mxu1 %v469_v0  ;;  %v121_v5 = vld [vmem:[%s616_s3 + $0x10] sm:$0xff]  ;;  %v120_v6 = vld [vmem:[%s616_s3 + $0x8] sm:$0xff] }
   0x3   :  { %419 = vmatprep.subr.mxu0 %v469_v0  ;;  %432 = vmatprep.mubr.msk.f32.mxu1 %vm470_vm0, %v469_v0  ;;  %v119_v7 = vld [vmem:[%s616_s3] sm:$0xff]  ;;  %v208_v13 = vld [vmem:[%s618_s5 + $0x18] sm:$0xff]  ;;  %v207_v14 = vld [vmem:[%s618_s5 + $0x10] sm:$0xff] }
   0x4   :  { %420 = vmatpush3.msra.mxu0 %v35_v2  ;;  %425 = vmatpush3.msra.mxu1 %v122_v4  ;;  %v390_v8 = vld [vmem:[%s617_s2] ss:$0 sm:$0xff]  ;;  %v206_v15 = vld [vmem:[%s618_s5 + $0x8] sm:$0xff]  ;;  %v293_v22 = vld [vmem:[%s620_s7 + $0x18] sm:$0xff] }
   0x5   :  { %422 = vmatmul.mubr.msk.f32.vlgmr.msra.gmra.mxu0 %vm44_vm1, %v34_v3  ;;  %435 = vmatprep.subr.mxu0 %v469_v0  ;;  %v205_v16 = vld [vmem:[%s618_s5] sm:$0xff]  ;;  %v292_v23 = vld [vmem:[%s620_s7 + $0x10] sm:$0xff]  ;;  %v291_v24 = vld [vmem:[%s620_s7 + $0x8] sm:$0xff] }
   0x6   :  { %443 = vmatprep.mubr.msk.f32.mxu0 %vm470_vm0, %v469_v0  ;;  %426 = vmatprep.subr.mxu1 %v469_v0  ;;  %v392_v17 = vld [vmem:[%s619_s4] ss:$0 sm:$0xff] }
   0x7   :  { %427 = vmatpush3.msra.mxu1 %v121_v5  ;;  %436 = vmatpush3.msra.mxu0 %v208_v13  ;;  %v290_v25 = vld [vmem:[%s620_s7] sm:$0xff] }
   0x8   :  { %428 = vmatprep.subr.mxu1 %v469_v0  ;;  %437 = vmatprep.subr.mxu0 %v469_v0  ;;  %v394_v26 = vld [vmem:[%s621_s6] ss:$0 sm:$0xff] }
   0x9   :  { %429 = vmatpush3.msra.mxu1 %v120_v6  ;;  %438 = vmatpush3.msra.mxu0 %v207_v14  ;;  %v396_v31 = vld [vmem:[%s622_s8] ss:$0 sm:$0xff] }
   0xa   :  { %430 = vmatprep.subr.mxu1 %v469_v0  ;;  %439 = vmatprep.subr.mxu0 %v469_v0 }
   0xb   :  { %431 = vmatpush3.msra.mxu1 %v119_v7  ;;  %440 = vmatpush3.msra.mxu0 %v206_v15 }
   0xc   :  { %446 = vmatprep.subr.mxu1 %v469_v0  ;;  %441 = vmatprep.subr.mxu0 %v469_v0 }
   0xd   :  { %442 = vmatpush3.msra.mxu0 %v205_v16 }
  0xc5   :  { %v114_v9 = vpop.f32.mrf.mxu0 }
  0xc6   :  { %v115_v10 = vadd.f32 %v390_v8, %v114_v9 }
  0xc7   :  { %v423_v11 = vpop.f32.mrf.mxu0 }
  0xc8   :  { %459 = vtanh.f32 %v115_v10 }
  0xd5   :  { %v460_v12 = vpop.eup %459 }
  0xd6   :  { %433 = vmatmul.mubr.msk.f32.vlgmr.msra.gmra.mxu1 %vm130_vm2, %v460_v12 }
  0xd7   :  { %454 = vmatprep.mubr.msk.f32.mxu1 %vm470_vm0, %v469_v0  ;;  %447 = vmatpush3.msra.mxu1 %v293_v22 }
  0xd8   :  { %448 = vmatprep.subr.mxu1 %v469_v0 }
  0xd9   :  { %449 = vmatpush3.msra.mxu1 %v292_v23 }
  0xda   :  { %450 = vmatprep.subr.mxu1 %v469_v0 }
  0xdb   :  { %451 = vmatpush3.msra.mxu1 %v291_v24 }
  0xdc   :  { %452 = vmatprep.subr.mxu1 %v469_v0 }
  0xdd   :  { %453 = vmatpush3.msra.mxu1 %v290_v25 }
 0x196   :  { %v200_v18 = vpop.f32.mrf.mxu1 }
 0x197   :  { %v201_v19 = vadd.f32 %v392_v17, %v200_v18 }
 0x198   :  { %v434_v20 = vpop.f32.mrf.mxu1 }
 0x199   :  { %461 = vtanh.f32 %v201_v19 }
 0x1a6   :  { %v462_v21 = vpop.eup %461 }
 0x1a7   :  { %444 = vmatmul.mubr.msk.f32.vlgmr.msra.gmra.mxu0 %vm130_vm2, %v462_v21 }
 0x267   :  { %v285_v27 = vpop.f32.mrf.mxu0 }
 0x268   :  { %v286_v28 = vadd.f32 %v394_v26, %v285_v27 }
 0x269   :  { %v445_v29 = vpop.f32.mrf.mxu0 }
 0x26a   :  { %463 = vtanh.f32 %v286_v28 }
 0x277   :  { %v464_v30 = vpop.eup %463 }
 0x278   :  { %455 = vmatmul.mubr.msk.f32.vlgmr.msra.gmra.mxu1 %vm130_vm2, %v464_v30 }
 0x338   :  { %v370_v32 = vpop.f32.mrf.mxu1 }
 0x339   :  { %v371_v33 = vadd.f32 %v396_v31, %v370_v32 }
 0x33a   :  { %v456_v34 = vpop.f32.mrf.mxu1 }
 0x33b   :  { %374 = vst [vmem:[%s623_s10] sm:$0xff] %v371_v33  ;;  %v398_v35 = vmul.f32 -1.442695, %v371_v33 }
 0x33d   :  { %465 = vpow2.f32 %v398_v35 }
 0x34a   :  { %v466_v36 = vpop.eup %465 }
 0x34b   :  { %v378_v37 = vadd.f32 1.0, %v466_v36 }
 0x34d   :  { %467 = vrcp.f32 %v378_v37 }
 0x35a   :  { %v468_v38 = vpop.eup %467 }
 0x35b   :  { %381 = vst [vmem:[%s624_s9] sm:$0xff] %v468_v38 }

</bundles_post_ra>
